<compile_context>
chip_gen: v6e
topology: v6e:2x2x1
jax: 0.10.0
libtpu: 0.0.40
codegen_flags: <defaults>
</compile_context>

<pallas_src>
import jax
import jax.numpy as jnp
from jax.experimental import pallas as pl
from jax.experimental.pallas import tpu as pltpu

EPS = 1e-3  # matches BatchNorm2d(64, eps=0.001)


def conv_bn_relu_kernel(x_ref, w_ref, gb_ref, o_ref):
    # x_ref: [Cin, M], w_ref: [Cout_blk, Cin], gb_ref: [Cout_blk, 2]
    # (col 0 = gamma, col 1 = beta), o_ref: [Cout_blk, M]
    y = jnp.dot(w_ref[...], x_ref[...], preferred_element_type=jnp.float32)  # [Cout_blk, M]
    m = y.shape[1]
    inv_m = 1.0 / m
    # Two-pass batch statistics over M (= N*H*W), per output channel.
    mean = jnp.sum(y, axis=1, keepdims=True) * inv_m          # [Cout_blk, 1]
    centered = y - mean
    var = jnp.sum(centered * centered, axis=1, keepdims=True) * inv_m
    inv_std = jax.lax.rsqrt(var + EPS)                         # EUP
    scale = gb_ref[:, 0:1] * inv_std                           # gamma / std
    beta = gb_ref[:, 1:2]
    o_ref[...] = jnp.maximum(centered * scale + beta, 0.0).astype(o_ref.dtype)


def _cout_splits(cout):
    # Use both TensorCores only on v7x (2 TCs/chip). On single-TC chips
    # (v5e/v6e) a 2-point grid is just a serial loop adding per-step overhead.
    try:
        kind = jax.devices()[0].device_kind.lower()
    except Exception:
        return 1
    if "v7" in kind and cout % 16 == 0:
        return 2
    return 1


def conv2d_bn_relu(x_nchw, w_oihw, gamma, beta):
    N, Cin, H, W = x_nchw.shape
    Cout = w_oihw.shape[0]
    M = N * H * W

    # NCHW -> [Cin, M]: pure reshape when N == 1 (no data movement).
    if N == 1:
        x2d = x_nchw.reshape(Cin, M)
    else:
        # TODO(synk): for N>1, fold the batch axis into the grid instead of
        # paying these two XLA transposes.
        x2d = jnp.transpose(x_nchw, (1, 0, 2, 3)).reshape(Cin, M)

    w2d = w_oihw.reshape(Cout, Cin)                 # no transpose needed
    gb = jnp.stack([gamma, beta], axis=1)           # [Cout, 2], single input

    num_splits = _cout_splits(Cout)
    cout_blk = Cout // num_splits

    in_bytes = jnp.dtype(x2d.dtype).itemsize
    out_bytes = jnp.dtype(x_nchw.dtype).itemsize
    cost = pl.CostEstimate(
        flops=2 * Cout * Cin * M,
        transcendentals=Cout,
        bytes_accessed=(Cin * M + Cout * Cin) * in_bytes
        + 2 * Cout * 4
        + Cout * M * out_bytes,
    )

    out2d = pl.pallas_call(
        conv_bn_relu_kernel,
        out_shape=jax.ShapeDtypeStruct((Cout, M), x_nchw.dtype),
        grid=(num_splits,),
        in_specs=[
            pl.BlockSpec((Cin, M), lambda i: (0, 0)),        # x: same block every step
            pl.BlockSpec((cout_blk, Cin), lambda i: (i, 0)),  # w: split over Cout
            pl.BlockSpec((cout_blk, 2), lambda i: (i, 0)),    # packed gamma/beta
        ],
        out_specs=pl.BlockSpec((cout_blk, M), lambda i: (i, 0)),
        compiler_params=pltpu.CompilerParams(
            dimension_semantics=("parallel",)),
        cost_estimate=cost,
    )(x2d, w2d, gb)

    # [Cout, M] -> NCHW (pure reshape for N == 1).
    if N == 1:
        return out2d.reshape(1, Cout, H, W)
    return jnp.transpose(out2d.reshape(Cout, N, H, W), (1, 0, 2, 3))


def reference(x_nchw, w_oihw, gamma, beta):
    N, Cin, H, W = x_nchw.shape
    Cout = w_oihw.shape[0]
    x2d = jnp.transpose(x_nchw, (0, 2, 3, 1)).reshape(-1, Cin)      # [M, Cin]
    w2d = jnp.transpose(w_oihw.reshape(Cout, Cin), (1, 0))          # [Cin, Cout]
    y = x2d @ w2d                                                   # [M, Cout]
    mean = jnp.mean(y, axis=0, keepdims=True)
    var = jnp.mean((y - mean) ** 2, axis=0, keepdims=True)
    out = (y - mean) / jnp.sqrt(var + EPS) * gamma[None, :] + beta[None, :]
    out = jnp.maximum(out, 0.0)
    return jnp.transpose(out.reshape(N, H, W, Cout), (0, 3, 1, 2))


if __name__ == "__main__":
    key = jax.random.PRNGKey(0)
    kx, kw, kg, kb = jax.random.split(key, 4)

    # Matches the module: Conv2d(512, 64, kernel_size=1) on [1, 512, 14, 14]
    N, Cin, H, W, Cout = 1, 512, 14, 14, 64
    x = jax.random.normal(kx, (N, Cin, H, W), dtype=jnp.float32)
    w = jax.random.normal(kw, (Cout, Cin, 1, 1), dtype=jnp.float32) * (1.0 / Cin ** 0.5)
    gamma = 1.0 + 0.1 * jax.random.normal(kg, (Cout,), dtype=jnp.float32)
    beta = 0.1 * jax.random.normal(kb, (Cout,), dtype=jnp.float32)

    out = conv2d_bn_relu(x, w, gamma, beta)
    out = jax.block_until_ready(out)

    ref = reference(x, w, gamma, beta)
    assert out.shape == (N, Cout, H, W)
    assert jnp.allclose(out, ref, atol=1e-3, rtol=1e-3)
    print("KERNEL_OK")
</pallas_src>

<mosaic_0001>
module attributes {stable_mosaic.version = 11 : i64} {
  func.func @conv_bn_relu_kernel(%arg0: i32, %arg1: memref<512x196xf32, #tpu.memory_space<vmem>>, %arg2: memref<64x512xf32, #tpu.memory_space<vmem>>, %arg3: memref<64x2xf32, #tpu.memory_space<vmem>>, %arg4: memref<64x196xf32, #tpu.memory_space<vmem>>) attributes {dimension_semantics = [#tpu.dimension_semantics<parallel>], iteration_bounds = array<i64: 1>, scalar_prefetch = 0 : i64, scratch_operands = 0 : i64, tpu.core_type = #tpu.core_type<tc>, window_params = [{pipeline_mode = #tpu.pipeline_mode<synchronous>, transform_indices = @transform_0, window_bounds = array<i64: 512, 196>}, {transform_indices = @transform_1, window_bounds = array<i64: 64, 512>}, {transform_indices = @transform_2, window_bounds = array<i64: 64, 2>}, {transform_indices = @transform_3, window_bounds = array<i64: 64, 196>}]} {
    %c0 = arith.constant 0 : index
    %c0_0 = arith.constant 0 : index
    %0 = vector.load %arg2[%c0, %c0_0] : memref<64x512xf32, #tpu.memory_space<vmem>>, vector<64x512xf32>
    %c0_1 = arith.constant 0 : index
    %c0_2 = arith.constant 0 : index
    %1 = vector.load %arg1[%c0_1, %c0_2] : memref<512x196xf32, #tpu.memory_space<vmem>>, vector<512x196xf32>
    %cst = arith.constant dense<0.000000e+00> : vector<64x196xf32>
    %2 = tpu.matmul %0, %1, %cst {dimension_numbers = #tpu.dot_dimension_numbers<[1], [0], [0], [1], [0, 0, 1, 1], [], []>} : vector<64x512xf32>, vector<512x196xf32>, vector<64x196xf32> -> vector<64x196xf32>
    %cst_3 = arith.constant dense<0.000000e+00> : vector<64xf32>
    %3 = vector.multi_reduction <add>, %2, %cst_3 [1] : vector<64x196xf32> to vector<64xf32>
    %4 = vector.shape_cast %3 : vector<64xf32> to vector<64x1xf32>
    %cst_4 = arith.constant 0.00510204071 : f32
    %5 = vector.broadcast %cst_4 : f32 to vector<64x1xf32>
    %6 = arith.mulf %4, %5 : vector<64x1xf32>
    %7 = vector.broadcast %6 : vector<64x1xf32> to vector<64x196xf32>
    %8 = arith.subf %2, %7 : vector<64x196xf32>
    %9 = arith.mulf %8, %8 : vector<64x196xf32>
    %cst_5 = arith.constant dense<0.000000e+00> : vector<64xf32>
    %10 = vector.multi_reduction <add>, %9, %cst_5 [1] : vector<64x196xf32> to vector<64xf32>
    %11 = vector.shape_cast %10 : vector<64xf32> to vector<64x1xf32>
    %cst_6 = arith.constant 0.00510204071 : f32
    %12 = vector.broadcast %cst_6 : f32 to vector<64x1xf32>
    %13 = arith.mulf %11, %12 : vector<64x1xf32>
    %cst_7 = arith.constant 1.000000e-03 : f32
    %14 = vector.broadcast %cst_7 : f32 to vector<64x1xf32>
    %15 = arith.addf %13, %14 : vector<64x1xf32>
    %16 = math.rsqrt %15 : vector<64x1xf32>
    %c0_8 = arith.constant 0 : index
    %c0_9 = arith.constant 0 : index
    %17 = vector.load %arg3[%c0_8, %c0_9] : memref<64x2xf32, #tpu.memory_space<vmem>>, vector<64x1xf32>
    %18 = arith.mulf %17, %16 : vector<64x1xf32>
    %c0_10 = arith.constant 0 : index
    %c1 = arith.constant 1 : index
    %19 = vector.load %arg3[%c0_10, %c1] : memref<64x2xf32, #tpu.memory_space<vmem>>, vector<64x1xf32>
    %20 = vector.broadcast %18 : vector<64x1xf32> to vector<64x196xf32>
    %21 = arith.mulf %8, %20 : vector<64x196xf32>
    %22 = vector.broadcast %19 : vector<64x1xf32> to vector<64x196xf32>
    %23 = arith.addf %21, %22 : vector<64x196xf32>
    %cst_11 = arith.constant 0.000000e+00 : f32
    %24 = vector.broadcast %cst_11 : f32 to vector<64x196xf32>
    %25 = arith.maximumf %23, %24 : vector<64x196xf32>
    %c0_12 = arith.constant 0 : index
    %c0_13 = arith.constant 0 : index
    %26 = vector.load %arg4[%c0_12, %c0_13] : memref<64x196xf32, #tpu.memory_space<vmem>>, vector<64x196xf32>
    tpu.vector_store %arg4[%c0_12, %c0_13], %25 {strides = array<i32>} : memref<64x196xf32, #tpu.memory_space<vmem>>, vector<64x196xf32>,
    return
  }
  func.func @transform_0(%arg0: i32) -> (i32, i32) {
    %c0_i32 = arith.constant 0 : i32
    %c0_i32_0 = arith.constant 0 : i32
    %c0_i32_1 = arith.constant 0 : i32
    return %c0_i32, %c0_i32_0 : i32, i32
  }
  func.func @transform_1(%arg0: i32) -> (i32, i32) {
    %c0_i32 = arith.constant 0 : i32
    %c0_i32_0 = arith.constant 0 : i32
    return %arg0, %c0_i32 : i32, i32
  }
  func.func @transform_2(%arg0: i32) -> (i32, i32) {
    %c0_i32 = arith.constant 0 : i32
    %c0_i32_0 = arith.constant 0 : i32
    return %arg0, %c0_i32 : i32, i32
  }
  func.func @transform_3(%arg0: i32) -> (i32, i32) {
    %c0_i32 = arith.constant 0 : i32
    %c0_i32_0 = arith.constant 0 : i32
    return %arg0, %c0_i32 : i32, i32
  }
}

</mosaic_0001>

<bundles_post_ra>
// kernel: tpu_custom_call.1
= control target key start
LH: loop header
LB: loop body
LE: loop exit
PB: predicated region body
PF: predicated region fallthrough
CT: control target
= control target key end

     0   :  { %s1459_s0 = inlined_call_operand.vmem [shape: f32[512,196], index: 0, kind: input, shape index: {}]   ;;  %s1460_s1 = inlined_call_operand.vmem [shape: f32[64,512], index: 1, kind: input, shape index: {}]   ;;  %s1461_s2 = inlined_call_operand.vmem [shape: f32[64,2], index: 2, kind: input, shape index: {}]   ;;  %s1462_s3 = inlined_call_operand.hbm [shape: f32[64,196], index: 3, kind: output, shape index: {}]  }
   0x1   :  { %v78_v0 = vld [vmem:[%s1459_s0 + $0xf8] sm:$0xff]  ;;  %v77_v2 = vld [vmem:[%s1459_s0 + $0xf0] sm:$0xff]  ;;  %v76_v4 = vld [vmem:[%s1459_s0 + $0xe8] sm:$0xff] }
   0x2   :  { %v142_v1 = vld [vmem:[%s1459_s0 + $0x2f8] sm:$0xff]  ;;  %175 = vmatprep.subr.mxu0 %v78_v0  ;;  %v141_v3 = vld [vmem:[%s1459_s0 + $0x2f0] sm:$0xff]  ;;  %v140_v5 = vld [vmem:[%s1459_s0 + $0x2e8] sm:$0xff] }
   0x3   :  { %288 = vmatprep.subr.mxu1 %v142_v1  ;;  %176 = vmatpush1.msra.mxu0 %v77_v2  ;;  %v75_v6 = vld [vmem:[%s1459_s0 + $0xe0] sm:$0xff]  ;;  %v74_v8 = vld [vmem:[%s1459_s0 + $0xd8] sm:$0xff]  ;;  %v73_v10 = vld [vmem:[%s1459_s0 + $0xd0] sm:$0xff] }
   0x4   :  { %289 = vmatpush1.msra.mxu1 %v141_v3  ;;  %v139_v7 = vld [vmem:[%s1459_s0 + $0x2e0] sm:$0xff]  ;;  %177 = vmatprep.subr.mxu0 %v76_v4  ;;  %v138_v9 = vld [vmem:[%s1459_s0 + $0x2d8] sm:$0xff]  ;;  %v137_v11 = vld [vmem:[%s1459_s0 + $0x2d0] sm:$0xff] }
   0x5   :  { %290 = vmatprep.subr.mxu1 %v140_v5  ;;  %178 = vmatpush1.msra.mxu0 %v75_v6  ;;  %v72_v12 = vld [vmem:[%s1459_s0 + $0xc8] sm:$0xff]  ;;  %v71_v14 = vld [vmem:[%s1459_s0 + $0xc0] sm:$0xff]  ;;  %v70_v16 = vld [vmem:[%s1459_s0 + $0xb8] sm:$0xff] }
   0x6   :  { %291 = vmatpush1.msra.mxu1 %v139_v7  ;;  %v136_v13 = vld [vmem:[%s1459_s0 + $0x2c8] sm:$0xff]  ;;  %179 = vmatprep.subr.mxu0 %v74_v8  ;;  %v135_v15 = vld [vmem:[%s1459_s0 + $0x2c0] sm:$0xff]  ;;  %v134_v17 = vld [vmem:[%s1459_s0 + $0x2b8] sm:$0xff] }
   0x7   :  { %292 = vmatprep.subr.mxu1 %v138_v9  ;;  %180 = vmatpush1.msra.mxu0 %v73_v10  ;;  %v69_v18 = vld [vmem:[%s1459_s0 + $0xb0] sm:$0xff]  ;;  %v68_v20 = vld [vmem:[%s1459_s0 + $0xa8] sm:$0xff]  ;;  %v67_v22 = vld [vmem:[%s1459_s0 + $0xa0] sm:$0xff] }
   0x8   :  { %293 = vmatpush1.msra.mxu1 %v137_v11  ;;  %181 = vmatprep.subr.mxu0 %v72_v12  ;;  %v133_v19 = vld [vmem:[%s1459_s0 + $0x2b0] sm:$0xff]  ;;  %v132_v21 = vld [vmem:[%s1459_s0 + $0x2a8] sm:$0xff]  ;;  %v131_v23 = vld [vmem:[%s1459_s0 + $0x2a0] sm:$0xff] }
   0x9   :  { %294 = vmatprep.subr.mxu1 %v136_v13  ;;  %182 = vmatpush1.msra.mxu0 %v71_v14  ;;  %v66_v24 = vld [vmem:[%s1459_s0 + $0x98] sm:$0xff]  ;;  %v65_v26 = vld [vmem:[%s1459_s0 + $0x90] sm:$0xff]  ;;  %v64_v28 = vld [vmem:[%s1459_s0 + $0x88] sm:$0xff] }
   0xa   :  { %295 = vmatpush1.msra.mxu1 %v135_v15  ;;  %183 = vmatprep.subr.mxu0 %v70_v16  ;;  %v130_v25 = vld [vmem:[%s1459_s0 + $0x298] sm:$0xff]  ;;  %v129_v27 = vld [vmem:[%s1459_s0 + $0x290] sm:$0xff]  ;;  %v128_v29 = vld [vmem:[%s1459_s0 + $0x288] sm:$0xff] }
   0xb   :  { %296 = vmatprep.subr.mxu1 %v134_v17  ;;  %184 = vmatpush1.msra.mxu0 %v69_v18  ;;  %v63_v30 = vld [vmem:[%s1459_s0 + $0x80] sm:$0xff]  ;;  %v62_v32 = vld [vmem:[%s1459_s0 + $0x78] sm:$0xff]  ;;  %v61_v34 = vld [vmem:[%s1459_s0 + $0x70] sm:$0xff] }
   0xc   :  { %297 = vmatpush1.msra.mxu1 %v133_v19  ;;  %185 = vmatprep.subr.mxu0 %v68_v20  ;;  %v127_v31 = vld [vmem:[%s1459_s0 + $0x280] sm:$0xff]  ;;  %v126_v33 = vld [vmem:[%s1459_s0 + $0x278] sm:$0xff]  ;;  %v125_v35 = vld [vmem:[%s1459_s0 + $0x270] sm:$0xff] }
   0xd   :  { %298 = vmatprep.subr.mxu1 %v132_v21  ;;  %186 = vmatpush1.msra.mxu0 %v67_v22  ;;  %v60_v36 = vld [vmem:[%s1459_s0 + $0x68] sm:$0xff]  ;;  %v59_v38 = vld [vmem:[%s1459_s0 + $0x60] sm:$0xff]  ;;  %v58_v40 = vld [vmem:[%s1459_s0 + $0x58] sm:$0xff] }
   0xe   :  { %299 = vmatpush1.msra.mxu1 %v131_v23  ;;  %187 = vmatprep.subr.mxu0 %v66_v24  ;;  %v124_v37 = vld [vmem:[%s1459_s0 + $0x268] sm:$0xff]  ;;  %v123_v39 = vld [vmem:[%s1459_s0 + $0x260] sm:$0xff]  ;;  %v122_v41 = vld [vmem:[%s1459_s0 + $0x258] sm:$0xff] }
   0xf   :  { %300 = vmatprep.subr.mxu1 %v130_v25  ;;  %188 = vmatpush1.msra.mxu0 %v65_v26  ;;  %v57_v42 = vld [vmem:[%s1459_s0 + $0x50] sm:$0xff]  ;;  %v56_v44 = vld [vmem:[%s1459_s0 + $0x48] sm:$0xff]  ;;  %v55_v46 = vld [vmem:[%s1459_s0 + $0x40] sm:$0xff] }
  0x10   :  { %301 = vmatpush1.msra.mxu1 %v129_v27  ;;  %189 = vmatprep.subr.mxu0 %v64_v28  ;;  %v121_v43 = vld [vmem:[%s1459_s0 + $0x250] sm:$0xff]  ;;  %v120_v45 = vld [vmem:[%s1459_s0 + $0x248] sm:$0xff]  ;;  %v119_v47 = vld [vmem:[%s1459_s0 + $0x240] sm:$0xff] }
  0x11   :  { %302 = vmatprep.subr.mxu1 %v128_v29  ;;  %190 = vmatpush1.msra.mxu0 %v63_v30  ;;  %v54_v48 = vld [vmem:[%s1459_s0 + $0x38] sm:$0xff]  ;;  %v53_v50 = vld [vmem:[%s1459_s0 + $0x30] sm:$0xff]  ;;  %v52_v52 = vld [vmem:[%s1459_s0 + $0x28] sm:$0xff] }
  0x12   :  { %303 = vmatpush1.msra.mxu1 %v127_v31  ;;  %191 = vmatprep.subr.mxu0 %v62_v32  ;;  %v118_v49 = vld [vmem:[%s1459_s0 + $0x238] sm:$0xff]  ;;  %v117_v51 = vld [vmem:[%s1459_s0 + $0x230] sm:$0xff]  ;;  %v116_v53 = vld [vmem:[%s1459_s0 + $0x228] sm:$0xff] }
  0x13   :  { %304 = vmatprep.subr.mxu1 %v126_v33  ;;  %192 = vmatpush1.msra.mxu0 %v61_v34  ;;  %v51_v54 = vld [vmem:[%s1459_s0 + $0x20] sm:$0xff]  ;;  %v50_v56 = vld [vmem:[%s1459_s0 + $0x18] sm:$0xff]  ;;  %v49_v58 = vld [vmem:[%s1459_s0 + $0x10] sm:$0xff] }
  0x14   :  { %305 = vmatpush1.msra.mxu1 %v125_v35  ;;  %193 = vmatprep.subr.mxu0 %v60_v36  ;;  %v115_v55 = vld [vmem:[%s1459_s0 + $0x220] sm:$0xff]  ;;  %v114_v57 = vld [vmem:[%s1459_s0 + $0x218] sm:$0xff]  ;;  %v113_v59 = vld [vmem:[%s1459_s0 + $0x210] sm:$0xff] }
  0x15   :  { %306 = vmatprep.subr.mxu1 %v124_v37  ;;  %194 = vmatpush1.msra.mxu0 %v59_v38  ;;  %v48_v60 = vld [vmem:[%s1459_s0 + $0x8] sm:$0xff]  ;;  %v47_v62 = vld [vmem:[%s1459_s0] sm:$0xff]  ;;  %v110_v0 = vld [vmem:[%s1459_s0 + $0x1f8] sm:$0xff] }
  0x16   :  { %307 = vmatpush1.msra.mxu1 %v123_v39  ;;  %195 = vmatprep.subr.mxu0 %v58_v40  ;;  %v112_v61 = vld [vmem:[%s1459_s0 + $0x208] sm:$0xff]  ;;  %v111_v63 = vld [vmem:[%s1459_s0 + $0x200] sm:$0xff]  ;;  %v174_v1 = vld [vmem:[%s1459_s0 + $0x3f8] sm:$0xff] }
  0x17   :  { %308 = vmatprep.subr.mxu1 %v122_v41  ;;  %196 = vmatpush1.msra.mxu0 %v57_v42  ;;  %v109_v2 = vld [vmem:[%s1459_s0 + $0x1f0] sm:$0xff]  ;;  %v108_v4 = vld [vmem:[%s1459_s0 + $0x1e8] sm:$0xff]  ;;  %v107_v6 = vld [vmem:[%s1459_s0 + $0x1e0] sm:$0xff] }
  0x18   :  { %309 = vmatpush1.msra.mxu1 %v121_v43  ;;  %197 = vmatprep.subr.mxu0 %v56_v44  ;;  %v173_v3 = vld [vmem:[%s1459_s0 + $0x3f0] sm:$0xff]  ;;  %v172_v5 = vld [vmem:[%s1459_s0 + $0x3e8] sm:$0xff]  ;;  %v171_v7 = vld [vmem:[%s1459_s0 + $0x3e0] sm:$0xff] }
  0x19   :  { %310 = vmatprep.subr.mxu1 %v120_v45  ;;  %198 = vmatpush1.msra.mxu0 %v55_v46  ;;  %v106_v8 = vld [vmem:[%s1459_s0 + $0x1d8] sm:$0xff]  ;;  %v105_v10 = vld [vmem:[%s1459_s0 + $0x1d0] sm:$0xff]  ;;  %v104_v12 = vld [vmem:[%s1459_s0 + $0x1c8] sm:$0xff] }
  0x1a   :  { %311 = vmatpush1.msra.mxu1 %v119_v47  ;;  %199 = vmatprep.subr.mxu0 %v54_v48  ;;  %v170_v9 = vld [vmem:[%s1459_s0 + $0x3d8] sm:$0xff]  ;;  %v169_v11 = vld [vmem:[%s1459_s0 + $0x3d0] sm:$0xff]  ;;  %v168_v13 = vld [vmem:[%s1459_s0 + $0x3c8] sm:$0xff] }
  0x1b   :  { %312 = vmatprep.subr.mxu1 %v118_v49  ;;  %200 = vmatpush1.msra.mxu0 %v53_v50  ;;  %v103_v14 = vld [vmem:[%s1459_s0 + $0x1c0] sm:$0xff]  ;;  %v102_v16 = vld [vmem:[%s1459_s0 + $0x1b8] sm:$0xff]  ;;  %v101_v18 = vld [vmem:[%s1459_s0 + $0x1b0] sm:$0xff] }
  0x1c   :  { %313 = vmatpush1.msra.mxu1 %v117_v51  ;;  %201 = vmatprep.subr.mxu0 %v52_v52  ;;  %v167_v15 = vld [vmem:[%s1459_s0 + $0x3c0] sm:$0xff]  ;;  %v166_v17 = vld [vmem:[%s1459_s0 + $0x3b8] sm:$0xff]  ;;  %v165_v19 = vld [vmem:[%s1459_s0 + $0x3b0] sm:$0xff] }
  0x1d   :  { %314 = vmatprep.subr.mxu1 %v116_v53  ;;  %202 = vmatpush1.msra.mxu0 %v51_v54  ;;  %v100_v20 = vld [vmem:[%s1459_s0 + $0x1a8] sm:$0xff]  ;;  %v99_v22 = vld [vmem:[%s1459_s0 + $0x1a0] sm:$0xff]  ;;  %v98_v24 = vld [vmem:[%s1459_s0 + $0x198] sm:$0xff] }
  0x1e   :  { %315 = vmatpush1.msra.mxu1 %v115_v55  ;;  %203 = vmatprep.subr.mxu0 %v50_v56  ;;  %v164_v21 = vld [vmem:[%s1459_s0 + $0x3a8] sm:$0xff]  ;;  %v163_v23 = vld [vmem:[%s1459_s0 + $0x3a0] sm:$0xff]  ;;  %v162_v25 = vld [vmem:[%s1459_s0 + $0x398] sm:$0xff] }
  0x1f   :  { %316 = vmatprep.subr.mxu1 %v114_v57  ;;  %204 = vmatpush1.msra.mxu0 %v49_v58  ;;  %v97_v26 = vld [vmem:[%s1459_s0 + $0x190] sm:$0xff]  ;;  %v96_v28 = vld [vmem:[%s1459_s0 + $0x188] sm:$0xff]  ;;  %v95_v30 = vld [vmem:[%s1459_s0 + $0x180] sm:$0xff] }
  0x20   :  { %317 = vmatpush1.msra.mxu1 %v113_v59  ;;  %205 = vmatprep.subr.mxu0 %v48_v60  ;;  %v161_v27 = vld [vmem:[%s1459_s0 + $0x390] sm:$0xff]  ;;  %v160_v29 = vld [vmem:[%s1459_s0 + $0x388] sm:$0xff]  ;;  %v159_v31 = vld [vmem:[%s1459_s0 + $0x380] sm:$0xff] }
  0x21   :  { %318 = vmatprep.subr.mxu1 %v112_v61  ;;  %206 = vmatpush1.msra.mxu0 %v47_v62  ;;  %v94_v32 = vld [vmem:[%s1459_s0 + $0x178] sm:$0xff]  ;;  %v93_v34 = vld [vmem:[%s1459_s0 + $0x170] sm:$0xff]  ;;  %v92_v36 = vld [vmem:[%s1459_s0 + $0x168] sm:$0xff] }
  0x22   :  { %319 = vmatpush1.msra.mxu1 %v111_v63  ;;  %207 = vmatprep.subr.mxu0 %v110_v0  ;;  %v158_v33 = vld [vmem:[%s1459_s0 + $0x378] sm:$0xff]  ;;  %v157_v35 = vld [vmem:[%s1459_s0 + $0x370] sm:$0xff]  ;;  %v156_v37 = vld [vmem:[%s1459_s0 + $0x368] sm:$0xff] }
  0x23   :  { %320 = vmatprep.subr.mxu1 %v174_v1  ;;  %208 = vmatpush2.msra.mxu0 %v109_v2  ;;  %v91_v38 = vld [vmem:[%s1459_s0 + $0x160] sm:$0xff]  ;;  %v90_v40 = vld [vmem:[%s1459_s0 + $0x158] sm:$0xff]  ;;  %v89_v42 = vld [vmem:[%s1459_s0 + $0x150] sm:$0xff] }
  0x24   :  { %321 = vmatpush2.msra.mxu1 %v173_v3  ;;  %209 = vmatprep.subr.mxu0 %v108_v4  ;;  %v155_v39 = vld [vmem:[%s1459_s0 + $0x360] sm:$0xff]  ;;  %v154_v41 = vld [vmem:[%s1459_s0 + $0x358] sm:$0xff]  ;;  %v153_v43 = vld [vmem:[%s1459_s0 + $0x350] sm:$0xff] }
  0x25   :  { %322 = vmatprep.subr.mxu1 %v172_v5  ;;  %210 = vmatpush2.msra.mxu0 %v107_v6  ;;  %v88_v44 = vld [vmem:[%s1459_s0 + $0x148] sm:$0xff]  ;;  %v87_v46 = vld [vmem:[%s1459_s0 + $0x140] sm:$0xff] }
  0x26   :  { %323 = vmatpush2.msra.mxu1 %v171_v7  ;;  %211 = vmatprep.subr.mxu0 %v106_v8  ;;  %v152_v45 = vld [vmem:[%s1459_s0 + $0x348] sm:$0xff]  ;;  %v151_v47 = vld [vmem:[%s1459_s0 + $0x340] sm:$0xff] }
  0x27   :  { %324 = vmatprep.subr.mxu1 %v170_v9  ;;  %212 = vmatpush2.msra.mxu0 %v105_v10 }
  0x28   :  { %325 = vmatpush2.msra.mxu1 %v169_v11  ;;  %213 = vmatprep.subr.mxu0 %v104_v12 }
  0x29   :  { %326 = vmatprep.subr.mxu1 %v168_v13  ;;  %214 = vmatpush2.msra.mxu0 %v103_v14 }
  0x2a   :  { %327 = vmatpush2.msra.mxu1 %v167_v15  ;;  %215 = vmatprep.subr.mxu0 %v102_v16 }
  0x2b   :  { %328 = vmatprep.subr.mxu1 %v166_v17  ;;  %216 = vmatpush2.msra.mxu0 %v101_v18 }
  0x2c   :  { %329 = vmatpush2.msra.mxu1 %v165_v19  ;;  %217 = vmatprep.subr.mxu0 %v100_v20 }
  0x2d   :  { %330 = vmatprep.subr.mxu1 %v164_v21  ;;  %218 = vmatpush2.msra.mxu0 %v99_v22 }
  0x2e   :  { %331 = vmatpush2.msra.mxu1 %v163_v23  ;;  %219 = vmatprep.subr.mxu0 %v98_v24 }
  0x2f   :  { %332 = vmatprep.subr.mxu1 %v162_v25  ;;  %220 = vmatpush2.msra.mxu0 %v97_v26 }
  0x30   :  { %333 = vmatpush2.msra.mxu1 %v161_v27  ;;  %221 = vmatprep.subr.mxu0 %v96_v28 }
  0x31   :  { %334 = vmatprep.subr.mxu1 %v160_v29  ;;  %222 = vmatpush2.msra.mxu0 %v95_v30 }
  0x32   :  { %335 = vmatpush2.msra.mxu1 %v159_v31  ;;  %223 = vmatprep.subr.mxu0 %v94_v32 }
  0x33   :  { %336 = vmatprep.subr.mxu1 %v158_v33  ;;  %224 = vmatpush2.msra.mxu0 %v93_v34 }
  0x34   :  { %337 = vmatpush2.msra.mxu1 %v157_v35  ;;  %225 = vmatprep.subr.mxu0 %v92_v36 }
  0x35   :  { %338 = vmatprep.subr.mxu1 %v156_v37  ;;  %226 = vmatpush2.msra.mxu0 %v91_v38 }
  0x36   :  { %339 = vmatpush2.msra.mxu1 %v155_v39  ;;  %227 = vmatprep.subr.mxu0 %v90_v40 }
  0x37   :  { %340 = vmatprep.subr.mxu1 %v154_v41 }
  0x38   :  { %8 = vsyncpa [#allocation3], 0  ;;  %228 = vmatpush2.msra.mxu0 %v89_v42  ;;  %341 = vmatpush2.msra.mxu1 %v153_v43  ;;  %v86_v48 = vld [vmem:[%s1459_s0 + $0x138] sm:$0xff]  ;;  %v85_v50 = vld [vmem:[%s1459_s0 + $0x130] sm:$0xff]  ;;  %vm401_vm0 = vcmask 556032  }
  0x39   :  { %v150_v49 = vld [vmem:[%s1459_s0 + $0x338] sm:$0xff]  ;;  %229 = vmatprep.subr.mxu0 %v88_v44  ;;  %342 = vmatprep.subr.mxu1 %v152_v45  ;;  %v149_v51 = vld [vmem:[%s1459_s0 + $0x330] sm:$0xff]  ;;  %v84_v52 = vld [vmem:[%s1459_s0 + $0x128] sm:$0xff] }
  0x3a   :  { %230 = vmatpush2.msra.mxu0 %v87_v46  ;;  %343 = vmatpush2.msra.mxu1 %v151_v47  ;;  %v148_v53 = vld [vmem:[%s1459_s0 + $0x328] sm:$0xff]  ;;  %v83_v54 = vld [vmem:[%s1459_s0 + $0x120] sm:$0xff]  ;;  %v82_v56 = vld [vmem:[%s1459_s0 + $0x118] sm:$0xff] }
  0x3b   :  { %231 = vmatprep.subr.mxu0 %v86_v48  ;;  %344 = vmatprep.subr.mxu1 %v150_v49  ;;  %v147_v55 = vld [vmem:[%s1459_s0 + $0x320] sm:$0xff]  ;;  %v146_v57 = vld [vmem:[%s1459_s0 + $0x318] sm:$0xff]  ;;  %v81_v58 = vld [vmem:[%s1459_s0 + $0x110] sm:$0xff] }
  0x3c   :  { %232 = vmatpush2.msra.mxu0 %v85_v50  ;;  %345 = vmatpush2.msra.mxu1 %v149_v51  ;;  %v145_v59 = vld [vmem:[%s1459_s0 + $0x310] sm:$0xff]  ;;  %v80_v60 = vld [vmem:[%s1459_s0 + $0x108] sm:$0xff]  ;;  %v79_v62 = vld [vmem:[%s1459_s0 + $0x100] sm:$0xff] }
  0x3d   :  { %233 = vmatprep.subr.mxu0 %v84_v52  ;;  %346 = vmatprep.subr.mxu1 %v148_v53  ;;  %v144_v61 = vld [vmem:[%s1459_s0 + $0x308] sm:$0xff]  ;;  %v143_v0 = vld [vmem:[%s1459_s0 + $0x300] sm:$0xff]  ;;  %v18_v1 = vld [vmem:[%s1460_s1 + $0x18] sm:$0xff] }
  0x3e   :  { %234 = vmatpush2.msra.mxu0 %v83_v54  ;;  %347 = vmatpush2.msra.mxu1 %v147_v55  ;;  %v16_v63 = vld [vmem:[%s1460_s1 + $0x8] sm:$0xff]  ;;  %v15_v2 = vld [vmem:[%s1460_s1] sm:$0xff]  ;;  %v17_v3 = vld [vmem:[%s1460_s1 + $0x10] sm:$0xff] }
  0x3f   :  { %235 = vmatprep.subr.mxu0 %v82_v56  ;;  %348 = vmatprep.subr.mxu1 %v146_v57  ;;  %v20_v4 = vld [vmem:[%s1460_s1 + $0x28] sm:$0xff]  ;;  %v22_v5 = vld [vmem:[%s1460_s1 + $0x38] sm:$0xff]  ;;  %v19_v6 = vld [vmem:[%s1460_s1 + $0x20] sm:$0xff] }
  0x40   :  { %236 = vmatpush2.msra.mxu0 %v81_v58  ;;  %349 = vmatpush2.msra.mxu1 %v145_v59  ;;  %v21_v7 = vld [vmem:[%s1460_s1 + $0x30] sm:$0xff]  ;;  %v24_v8 = vld [vmem:[%s1460_s1 + $0x48] sm:$0xff]  ;;  %v26_v9 = vld [vmem:[%s1460_s1 + $0x58] sm:$0xff] }
  0x41   :  { %237 = vmatprep.subr.mxu0 %v80_v60  ;;  %350 = vmatprep.subr.mxu1 %v144_v61  ;;  %v23_v10 = vld [vmem:[%s1460_s1 + $0x40] sm:$0xff]  ;;  %v25_v11 = vld [vmem:[%s1460_s1 + $0x50] sm:$0xff]  ;;  %v28_v12 = vld [vmem:[%s1460_s1 + $0x68] sm:$0xff] }
  0x42   :  { %238 = vmatpush2.msra.mxu0 %v79_v62  ;;  %239 = vmatprep.mubr.f32.mxu0 %v16_v63  ;;  %v30_v13 = vld [vmem:[%s1460_s1 + $0x78] sm:$0xff]  ;;  %v27_v14 = vld [vmem:[%s1460_s1 + $0x60] sm:$0xff]  ;;  %v29_v15 = vld [vmem:[%s1460_s1 + $0x70] sm:$0xff] }
  0x43   :  { %351 = vmatpush2.msra.mxu1 %v143_v0  ;;  %352 = vmatprep.mubr.f32.mxu1 %v18_v1  ;;  %v32_v16 = vld [vmem:[%s1460_s1 + $0x88] sm:$0xff]  ;;  %v34_v17 = vld [vmem:[%s1460_s1 + $0x98] sm:$0xff]  ;;  %v31_v18 = vld [vmem:[%s1460_s1 + $0x80] sm:$0xff] }
  0x44   :  { %240 = vmatmul.mubr.f32.vlgmr.msra.gmra.mxu0 %v15_v2  ;;  %353 = vmatmul.mubr.f32.vlgmr.msra.gmra.mxu1 %v17_v3  ;;  %v33_v19 = vld [vmem:[%s1460_s1 + $0x90] sm:$0xff]  ;;  %v36_v20 = vld [vmem:[%s1460_s1 + $0xa8] sm:$0xff]  ;;  %v38_v21 = vld [vmem:[%s1460_s1 + $0xb8] sm:$0xff] }
  0x45   :  { %245 = vmatprep.mubr.f32.mxu0 %v20_v4  ;;  %358 = vmatprep.mubr.f32.mxu1 %v22_v5  ;;  %v35_v22 = vld [vmem:[%s1460_s1 + $0xa0] sm:$0xff]  ;;  %v37_v23 = vld [vmem:[%s1460_s1 + $0xb0] sm:$0xff]  ;;  %v40_v24 = vld [vmem:[%s1460_s1 + $0xc8] sm:$0xff] }
  0x46   :  { %v42_v25 = vld [vmem:[%s1460_s1 + $0xd8] sm:$0xff]  ;;  %v39_v26 = vld [vmem:[%s1460_s1 + $0xc0] sm:$0xff]  ;;  %v41_v27 = vld [vmem:[%s1460_s1 + $0xd0] sm:$0xff] }
  0x47   :  { %v44_v28 = vld [vmem:[%s1460_s1 + $0xe8] sm:$0xff]  ;;  %v46_v29 = vld [vmem:[%s1460_s1 + $0xf8] sm:$0xff]  ;;  %v43_v30 = vld [vmem:[%s1460_s1 + $0xe0] sm:$0xff] }
  0x48   :  { %246 = vmatmul.mubr.f32.gmra.mxu0 %v19_v6  ;;  %359 = vmatmul.mubr.f32.gmra.mxu1 %v21_v7  ;;  %v45_v31 = vld [vmem:[%s1460_s1 + $0xf0] sm:$0xff] }
  0x49   :  { %251 = vmatprep.mubr.f32.mxu0 %v24_v8  ;;  %364 = vmatprep.mubr.f32.mxu1 %v26_v9 }
  0x4c   :  { %252 = vmatmul.mubr.f32.gmra.mxu0 %v23_v10  ;;  %365 = vmatmul.mubr.f32.gmra.mxu1 %v25_v11 }
  0x4d   :  { %257 = vmatprep.mubr.f32.mxu0 %v28_v12  ;;  %370 = vmatprep.mubr.f32.mxu1 %v30_v13 }
  0x50   :  { %258 = vmatmul.mubr.f32.gmra.mxu0 %v27_v14  ;;  %371 = vmatmul.mubr.f32.gmra.mxu1 %v29_v15 }
  0x51   :  { %263 = vmatprep.mubr.f32.mxu0 %v32_v16  ;;  %376 = vmatprep.mubr.f32.mxu1 %v34_v17 }
  0x54   :  { %264 = vmatmul.mubr.f32.gmra.mxu0 %v31_v18  ;;  %377 = vmatmul.mubr.f32.gmra.mxu1 %v33_v19 }
  0x55   :  { %269 = vmatprep.mubr.f32.mxu0 %v36_v20  ;;  %382 = vmatprep.mubr.f32.mxu1 %v38_v21 }
  0x58   :  { %270 = vmatmul.mubr.f32.gmra.mxu0 %v35_v22  ;;  %383 = vmatmul.mubr.f32.gmra.mxu1 %v37_v23 }
  0x59   :  { %275 = vmatprep.mubr.f32.mxu0 %v40_v24  ;;  %388 = vmatprep.mubr.f32.mxu1 %v42_v25 }
  0x5c   :  { %276 = vmatmul.mubr.f32.gmra.mxu0 %v39_v26  ;;  %389 = vmatmul.mubr.f32.gmra.mxu1 %v41_v27 }
  0x5d   :  { %281 = vmatprep.mubr.f32.mxu0 %v44_v28  ;;  %394 = vmatprep.mubr.f32.mxu1 %v46_v29 }
  0x60   :  { %282 = vmatmul.mubr.f32.gmra.mxu0 %v43_v30  ;;  %395 = vmatmul.mubr.f32.gmra.mxu1 %v45_v31 }
 0x104   :  { %v241_v32 = vpop.f32.mrf.mxu0  ;;  %v354_v33 = vpop.f32.mrf.mxu1 }
 0x105   :  { %v1262_v37 = vadd.f32 %v354_v33, %v241_v32  ;;  %v755_v32 = vmov 1  }
 0x106   :  { %v243_v34 = vpop.f32.mrf.mxu0  ;;  %v356_v35 = vpop.f32.mrf.mxu1  ;;  %711 = vset.pattern.permute.xlu1 %v755_v32  ;;  %712 = vset.pattern.permute.xlu0 %v755_v32 }
 0x107   :  { %v1260_v36 = vadd.f32 %v356_v35, %v243_v34 }
 0x108   :  { %v247_v38 = vpop.f32.mrf.mxu0  ;;  %v360_v39 = vpop.f32.mrf.mxu1 }
 0x109   :  { %v402_v40 = vsel %vm401_vm0, %v1260_v36, 0.0  ;;  %v1269_v45 = vadd.f32 %v360_v39, %v247_v38 }
 0x10a   :  { %v249_v41 = vpop.f32.mrf.mxu0  ;;  %v362_v42 = vpop.f32.mrf.mxu1  ;;  %v403_v43 = vadd.f32 %v402_v40, %v1262_v37 }
 0x10b   :  { %v1267_v44 = vadd.f32 %v362_v42, %v249_v41 }
 0x10c   :  { %v366_v46 = vpop.f32.mrf.mxu1  ;;  %404 = vadd.xlane.f32.xlu0 %v403_v43  ;;  %v253_v47 = vpop.f32.mrf.mxu0 }
 0x10d   :  { %v406_v48 = vsel %vm401_vm0, %v1267_v44, 0.0  ;;  %v1276_v53 = vadd.f32 %v366_v46, %v253_v47 }
 0x10e   :  { %v255_v49 = vpop.f32.mrf.mxu0  ;;  %v368_v50 = vpop.f32.mrf.mxu1  ;;  %v407_v51 = vadd.f32 %v406_v48, %v1269_v45 }
 0x10f   :  { %v1274_v52 = vadd.f32 %v368_v50, %v255_v49 }
 0x110   :  { %v372_v54 = vpop.f32.mrf.mxu1  ;;  %408 = vadd.xlane.f32.xlu0 %v407_v51  ;;  %v259_v55 = vpop.f32.mrf.mxu0 }
 0x111   :  { %v410_v56 = vsel %vm401_vm0, %v1274_v52, 0.0  ;;  %v1283_v61 = vadd.f32 %v372_v54, %v259_v55 }
 0x112   :  { %v261_v57 = vpop.f32.mrf.mxu0  ;;  %v374_v58 = vpop.f32.mrf.mxu1  ;;  %v411_v59 = vadd.f32 %v410_v56, %v1276_v53 }
 0x113   :  { %v1281_v60 = vadd.f32 %v374_v58, %v261_v57 }
 0x114   :  { %v378_v62 = vpop.f32.mrf.mxu1  ;;  %412 = vadd.xlane.f32.xlu1 %v411_v59  ;;  %v265_v63 = vpop.f32.mrf.mxu0 }
 0x115   :  { %v414_v0 = vsel %vm401_vm0, %v1281_v60, 0.0  ;;  %v1290_v5 = vadd.f32 %v378_v62, %v265_v63 }
 0x116   :  { %v267_v1 = vpop.f32.mrf.mxu0  ;;  %v380_v2 = vpop.f32.mrf.mxu1  ;;  %v415_v3 = vadd.f32 %v414_v0, %v1283_v61 }
 0x117   :  { %v1288_v4 = vadd.f32 %v380_v2, %v267_v1 }
 0x118   :  { %v384_v6 = vpop.f32.mrf.mxu1  ;;  %416 = vadd.xlane.f32.xlu1 %v415_v3  ;;  %v271_v7 = vpop.f32.mrf.mxu0 }
 0x119   :  { %v418_v8 = vsel %vm401_vm0, %v1288_v4, 0.0  ;;  %v1297_v13 = vadd.f32 %v384_v6, %v271_v7 }
 0x11a   :  { %v273_v9 = vpop.f32.mrf.mxu0  ;;  %v386_v10 = vpop.f32.mrf.mxu1  ;;  %v419_v11 = vadd.f32 %v418_v8, %v1290_v5 }
 0x11b   :  { %v1295_v12 = vadd.f32 %v386_v10, %v273_v9 }
 0x11c   :  { %v390_v14 = vpop.f32.mrf.mxu1  ;;  %420 = vadd.xlane.f32.xlu0 %v419_v11  ;;  %v277_v15 = vpop.f32.mrf.mxu0 }
 0x11d   :  { %v422_v16 = vsel %vm401_vm0, %v1295_v12, 0.0  ;;  %v1304_v21 = vadd.f32 %v390_v14, %v277_v15 }
 0x11e   :  { %v279_v17 = vpop.f32.mrf.mxu0  ;;  %v392_v18 = vpop.f32.mrf.mxu1  ;;  %v423_v19 = vadd.f32 %v422_v16, %v1297_v13 }
 0x11f   :  { %v1302_v20 = vadd.f32 %v392_v18, %v279_v17 }
 0x120   :  { %v396_v22 = vpop.f32.mrf.mxu1  ;;  %424 = vadd.xlane.f32.xlu1 %v423_v19  ;;  %v283_v23 = vpop.f32.mrf.mxu0 }
 0x121   :  { %v426_v24 = vsel %vm401_vm0, %v1302_v20, 0.0  ;;  %v1311_v29 = vadd.f32 %v396_v22, %v283_v23 }
 0x122   :  { %v285_v25 = vpop.f32.mrf.mxu0  ;;  %v398_v26 = vpop.f32.mrf.mxu1  ;;  %v427_v27 = vadd.f32 %v426_v24, %v1304_v21 }
 0x123   :  { %v1309_v28 = vadd.f32 %v398_v26, %v285_v25 }
 0x124   :  { %428 = vadd.xlane.f32.xlu0 %v427_v27 }
 0x125   :  { %v430_v30 = vsel %vm401_vm0, %v1309_v28, 0.0 }
 0x126   :  { %v431_v31 = vadd.f32 %v430_v30, %v1311_v29 }
 0x128   :  { %432 = vadd.xlane.f32.xlu1 %v431_v31 }
 0x195   :  { %v405_v33 = vpop.xlane.xlu0 %404 }
 0x196   :  { %v434_v34 = vmul.f32 0.0051020407, %v405_v33 }
 0x198   :  { %v1319_v35 = vsub.f32 %v1262_v37, %v434_v34  ;;  %v1322_v38 = vsub.f32 %v1260_v36, %v434_v34 }
 0x199   :  { %v409_v39 = vpop.xlane.xlu0 %408 }
 0x19a   :  { %v435_v40 = vmul.f32 0.0051020407, %v409_v39  ;;  %v458_v41 = vmul.f32 %v1319_v35, %v1319_v35  ;;  %v459_v42 = vmul.f32 %v1322_v38, %v1322_v38 }
 0x19c   :  { %v1329_v43 = vsub.f32 %v1269_v45, %v435_v40  ;;  %v1332_v46 = vsub.f32 %v1267_v44, %v435_v40  ;;  %v474_v37 = vsel %vm401_vm0, %v459_v42, 0.0  ;;  %v532_v40 = vld [vmem:[%s1461_s2 + $0x10] sm:$0xff]  ;;  %v533_v42 = vld [vmem:[%s1461_s2 + $0x18] sm:$0xff] }
 0x19d   :  { %v413_v47 = vpop.xlane.xlu1 %412  ;;  %v475_v48 = vadd.f32 %v474_v37, %v458_v41  ;;  %v534_v41 = vld [vmem:[%s1461_s2 + $0x20] sm:$0xff]  ;;  %v535_v37 = vld [vmem:[%s1461_s2 + $0x28] sm:$0xff] }
 0x19e   :  { %v436_v36 = vmul.f32 0.0051020407, %v413_v47  ;;  %v460_v49 = vmul.f32 %v1329_v43, %v1329_v43  ;;  %v461_v50 = vmul.f32 %v1332_v46, %v1332_v46  ;;  %v756_v47 = vmov 0  }
 0x19f   :  { %476 = vadd.xlane.f32.xlu0 %v475_v48 }
 0x1a0   :  { %v1340_v51 = vsub.f32 %v1276_v53, %v436_v36  ;;  %v1343_v45 = vsub.f32 %v1274_v52, %v436_v36  ;;  %v478_v44 = vsel %vm401_vm0, %v461_v50, 0.0 }
 0x1a1   :  { %v417_v54 = vpop.xlane.xlu1 %416  ;;  %v479_v55 = vadd.f32 %v478_v44, %v460_v49 }
 0x1a2   :  { %v437_v56 = vmul.f32 0.0051020407, %v417_v54  ;;  %v462_v57 = vmul.f32 %v1340_v51, %v1340_v51  ;;  %v463_v58 = vmul.f32 %v1343_v45, %v1343_v45 }
 0x1a3   :  { %480 = vadd.xlane.f32.xlu1 %v479_v55 }
 0x1a4   :  { %v1351_v59 = vsub.f32 %v1283_v61, %v437_v56  ;;  %v1354_v53 = vsub.f32 %v1281_v60, %v437_v56  ;;  %v482_v52 = vsel %vm401_vm0, %v463_v58, 0.0 }
 0x1a5   :  { %v421_v62 = vpop.xlane.xlu0 %420  ;;  %v483_v63 = vadd.f32 %v482_v52, %v462_v57 }
 0x1a6   :  { %v438_v0 = vmul.f32 0.0051020407, %v421_v62  ;;  %v464_v1 = vmul.f32 %v1351_v59, %v1351_v59  ;;  %v465_v2 = vmul.f32 %v1354_v53, %v1354_v53 }
 0x1a7   :  { %484 = vadd.xlane.f32.xlu0 %v483_v63 }
 0x1a8   :  { %v1362_v3 = vsub.f32 %v1290_v5, %v438_v0  ;;  %v1365_v61 = vsub.f32 %v1288_v4, %v438_v0  ;;  %v486_v60 = vsel %vm401_vm0, %v465_v2, 0.0 }
 0x1a9   :  { %v425_v6 = vpop.xlane.xlu1 %424  ;;  %v487_v7 = vadd.f32 %v486_v60, %v464_v1 }
 0x1aa   :  { %v439_v8 = vmul.f32 0.0051020407, %v425_v6  ;;  %v466_v9 = vmul.f32 %v1362_v3, %v1362_v3  ;;  %v467_v10 = vmul.f32 %v1365_v61, %v1365_v61 }
 0x1ab   :  { %488 = vadd.xlane.f32.xlu1 %v487_v7 }
 0x1ac   :  { %v1373_v11 = vsub.f32 %v1297_v13, %v439_v8  ;;  %v1376_v5 = vsub.f32 %v1295_v12, %v439_v8  ;;  %v490_v4 = vsel %vm401_vm0, %v467_v10, 0.0 }
 0x1ad   :  { %v429_v14 = vpop.xlane.xlu0 %428  ;;  %v491_v15 = vadd.f32 %v490_v4, %v466_v9 }
 0x1ae   :  { %v440_v16 = vmul.f32 0.0051020407, %v429_v14  ;;  %v468_v17 = vmul.f32 %v1373_v11, %v1373_v11  ;;  %v469_v18 = vmul.f32 %v1376_v5, %v1376_v5 }
 0x1af   :  { %492 = vadd.xlane.f32.xlu0 %v491_v15  ;;  %v536_v15 = vld [vmem:[%s1461_s2 + $0x30] sm:$0xff] }
 0x1b0   :  { %v1384_v19 = vsub.f32 %v1304_v21, %v440_v16  ;;  %v1387_v13 = vsub.f32 %v1302_v20, %v440_v16  ;;  %v494_v12 = vsel %vm401_vm0, %v469_v18, 0.0 }
 0x1b1   :  { %v433_v22 = vpop.xlane.xlu1 %432  ;;  %v495_v23 = vadd.f32 %v494_v12, %v468_v17 }
 0x1b2   :  { %v441_v24 = vmul.f32 0.0051020407, %v433_v22  ;;  %v470_v25 = vmul.f32 %v1384_v19, %v1384_v19  ;;  %v471_v26 = vmul.f32 %v1387_v13, %v1387_v13 }
 0x1b3   :  { %496 = vadd.xlane.f32.xlu1 %v495_v23 }
 0x1b4   :  { %v1395_v27 = vsub.f32 %v1311_v29, %v441_v24  ;;  %v1398_v21 = vsub.f32 %v1309_v28, %v441_v24  ;;  %v498_v20 = vsel %vm401_vm0, %v471_v26, 0.0  ;;  %v530_v29 = vld [vmem:[%s1461_s2] sm:$0xff]  ;;  %v531_v28 = vld [vmem:[%s1461_s2 + $0x8] sm:$0xff] }
 0x1b5   :  { %v499_v30 = vadd.f32 %v498_v20, %v470_v25 }
 0x1b6   :  { %v472_v31 = vmul.f32 %v1395_v27, %v1395_v27  ;;  %v473_v33 = vmul.f32 %v1398_v21, %v1398_v21 }
 0x1b7   :  { %500 = vadd.xlane.f32.xlu0 %v499_v30 }
 0x1b8   :  { %v502_v34 = vsel %vm401_vm0, %v473_v33, 0.0 }
 0x1b9   :  { %v503_v39 = vadd.f32 %v502_v34, %v472_v31 }
 0x1bb   :  { %504 = vadd.xlane.f32.xlu1 %v503_v39  ;;  %v537_v39 = vld [vmem:[%s1461_s2 + $0x38] sm:$0xff]  ;;  %s757_s2 = smov [#allocation2]  }
 0x1bc   :  { %s695_s20 = sshll.u32 %s757_s2, 4  ;;  %s696_s20 = int_to_ptr.vmem [resolvable:$true] %s695_s20 }
 0x1bd   :  { %s733_s21 = scalar_lea.vmem %s696_s20, 2048  ;;  %p738_p1 = scmp.lt.s32.totalorder %s696_s20, %s696_s20 }
 0x1be   :  { %p734_p0 = scmp.ne.s32.totalorder %s696_s20, %s733_s21  ;;  %p739_p2 = scmp.lt.s32.totalorder %s733_s21, %s733_s21 }
 0x1c0   :  { %p740_p3 = por %p739_p2, %p738_p1 }
 0x1c2   :  { %p741_p4 = pnand %p740_p3, %p734_p0 }
 0x1cc   :  { %604 = vperm.xlu1 %711, %v530_v29  }
 0x1cd   :  { %609 = vperm.xlu0 %712, %v531_v28  }
 0x1d0   :  { %614 = vperm.xlu1 %711, %v532_v40  }
 0x1d1   :  { %624 = vperm.xlu0 %712, %v534_v41  }
 0x1d4   :  { %619 = vperm.xlu1 %711, %v533_v42  }
 0x1d5   :  { %713 = vset.pattern.permute.xlu0 %v756_v47 }
 0x1d8   :  { %629 = vperm.xlu1 %711, %v535_v37  }
 0x1dc   :  { %714 = vset.pattern.permute.xlu1 %v756_v47 }
 0x228   :  { %v477_v48 = vpop.xlane.xlu0 %476 }
 0x229   :  { %v506_v36 = vmul.f32 0.0051020407, %v477_v48 }
 0x22b   :  { %v514_v49 = vadd.f32 0.001, %v506_v36 }
 0x22c   :  { %v481_v50 = vpop.xlane.xlu1 %480 }
 0x22d   :  { %717 = vrsqrt.f32 %v514_v49  ;;  %v507_v44 = vmul.f32 0.0051020407, %v481_v50 }
 0x22f   :  { %v515_v54 = vadd.f32 0.001, %v507_v44 }
 0x230   :  { %v485_v55 = vpop.xlane.xlu0 %484 }
 0x231   :  { %719 = vrsqrt.f32 %v515_v54  ;;  %v508_v56 = vmul.f32 0.0051020407, %v485_v55 }
 0x233   :  { %v516_v57 = vadd.f32 0.001, %v508_v56 }
 0x234   :  { %v489_v58 = vpop.xlane.xlu1 %488 }
 0x235   :  { %721 = vrsqrt.f32 %v516_v57  ;;  %v509_v52 = vmul.f32 0.0051020407, %v489_v58 }
 0x237   :  { %v517_v62 = vadd.f32 0.001, %v509_v52 }
 0x238   :  { %v493_v63 = vpop.xlane.xlu0 %492 }
 0x239   :  { %723 = vrsqrt.f32 %v517_v62  ;;  %v510_v0 = vmul.f32 0.0051020407, %v493_v63 }
 0x23a   :  { %v718_v1 = vpop.eup %717 }
 0x23b   :  { %v518_v2 = vadd.f32 0.001, %v510_v0  ;;  %v538_v60 = vmul.f32 %v718_v1, %v530_v29 }
 0x23c   :  { %v497_v6 = vpop.xlane.xlu1 %496 }
 0x23d   :  { %725 = vrsqrt.f32 %v518_v2  ;;  %v511_v7 = vmul.f32 0.0051020407, %v497_v6  ;;  %548 = vperm.xlu0 %713, %v538_v60  }
 0x23e   :  { %v720_v8 = vpop.eup %719 }
 0x23f   :  { %v539_v9 = vmul.f32 %v720_v8, %v531_v28  ;;  %v519_v10 = vadd.f32 0.001, %v511_v7 }
 0x240   :  { %v501_v4 = vpop.xlane.xlu0 %500 }
 0x241   :  { %727 = vrsqrt.f32 %v519_v10  ;;  %v512_v14 = vmul.f32 0.0051020407, %v501_v4  ;;  %553 = vperm.xlu1 %714, %v539_v9   ;;  %715 = vset.pattern.permute.xlu0 %v755_v32 }
 0x242   :  { %v722_v16 = vpop.eup %721  ;;  %634 = vperm.xlu0 %715, %v536_v15  }
 0x243   :  { %v520_v17 = vadd.f32 0.001, %v512_v14  ;;  %v540_v18 = vmul.f32 %v722_v16, %v532_v40 }
 0x244   :  { %v505_v12 = vpop.xlane.xlu1 %504 }
 0x245   :  { %729 = vrsqrt.f32 %v520_v17  ;;  %v513_v22 = vmul.f32 0.0051020407, %v505_v12  ;;  %558 = vperm.xlu1 %714, %v540_v18  }
 0x246   :  { %v724_v23 = vpop.eup %723 }
 0x247   :  { %v521_v24 = vadd.f32 0.001, %v513_v22  ;;  %v541_v25 = vmul.f32 %v724_v23, %v533_v42 }
 0x248   :  { %v605_v40 = vpop.permute.xlu1 %604 }
 0x249   :  { %731 = vrsqrt.f32 %v521_v24  ;;  %563 = vperm.xlu1 %714, %v541_v25  }
 0x24a   :  { %v726_v26 = vpop.eup %725 }
 0x24b   :  { %v542_v20 = vmul.f32 %v726_v26, %v534_v41  ;;  %v610_v41 = vpop.permute.xlu0 %609 }
 0x24c   :  { %v615_v42 = vpop.permute.xlu1 %614 }
 0x24d   :  { %568 = vperm.xlu1 %714, %v542_v20  }
 0x24e   :  { %v728_v30 = vpop.eup %727 }
 0x24f   :  { %v543_v31 = vmul.f32 %v728_v30, %v535_v37  ;;  %v625_v48 = vpop.permute.xlu0 %624 }
 0x250   :  { %v620_v47 = vpop.permute.xlu1 %619 }
 0x251   :  { %573 = vperm.xlu1 %714, %v543_v31  }
 0x252   :  { %v730_v33 = vpop.eup %729 }
 0x253   :  { %v544_v34 = vmul.f32 %v730_v33, %v536_v15 }
 0x254   :  { %v630_v37 = vpop.permute.xlu1 %629 }
 0x255   :  { %578 = vperm.xlu1 %714, %v544_v34  }
 0x256   :  { %v732_v29 = vpop.eup %731 }
 0x257   :  { %v545_v28 = vmul.f32 %v732_v29, %v537_v39 }
 0x259   :  { %583 = vperm.xlu1 %714, %v545_v28  }
 0x25d   :  { %716 = vset.pattern.permute.xlu1 %v755_v32 }
 0x25e   :  { %639 = vperm.xlu1 %716, %v537_v39  }
 0x2b8   :  { %v549_v36 = vpop.permute.xlu0 %548 }
 0x2b9   :  { %v586_v49 = vmul.f32 %v549_v36, %v1319_v35  ;;  %v587_v50 = vmul.f32 %v549_v36, %v1322_v38 }
 0x2bb   :  { %v642_v44 = vadd.f32 %v605_v40, %v586_v49  ;;  %v643_v54 = vadd.f32 %v605_v40, %v587_v50 }
 0x2bc   :  { %v554_v55 = vpop.permute.xlu1 %553 }
 0x2bd   :  { %v658_v56 = vmax.f32 %v642_v44, 0.0  ;;  %v659_v57 = vmax.f32 %v643_v54, 0.0  ;;  %v588_v58 = vmul.f32 %v554_v55, %v1329_v43  ;;  %v589_v32 = vmul.f32 %v554_v55, %v1332_v46  ;;  %v635_v25 = vpop.permute.xlu0 %634 }
 0x2bf   :  { %674 = vst [vmem:[#allocation2] sm:$0xff] %v658_v56  ;;  %675 = vst.msk [vmem:[#allocation2 + $0x8] sm:$0xff] %vm401_vm0, %v659_v57  ;;  %v644_v52 = vadd.f32 %v610_v41, %v588_v58  ;;  %v645_v62 = vadd.f32 %v610_v41, %v589_v32 }
 0x2c0   :  { %v559_v63 = vpop.permute.xlu1 %558 }
 0x2c1   :  { %v660_v0 = vmax.f32 %v644_v52, 0.0  ;;  %v661_v1 = vmax.f32 %v645_v62, 0.0  ;;  %v590_v35 = vmul.f32 %v559_v63, %v1340_v51  ;;  %v591_v38 = vmul.f32 %v559_v63, %v1343_v45 }
 0x2c3   :  { %676 = vst [vmem:[#allocation2 + $0x10] sm:$0xff] %v660_v0  ;;  %677 = vst.msk [vmem:[#allocation2 + $0x18] sm:$0xff] %vm401_vm0, %v661_v1  ;;  %v646_v2 = vadd.f32 %v615_v42, %v590_v35  ;;  %v647_v60 = vadd.f32 %v615_v42, %v591_v38 }
 0x2c4   :  { %v564_v43 = vpop.permute.xlu1 %563 }
 0x2c5   :  { %v662_v6 = vmax.f32 %v646_v2, 0.0  ;;  %v663_v46 = vmax.f32 %v647_v60, 0.0  ;;  %v592_v7 = vmul.f32 %v564_v43, %v1351_v59  ;;  %v593_v8 = vmul.f32 %v564_v43, %v1354_v53 }
 0x2c7   :  { %678 = vst [vmem:[#allocation2 + $0x20] sm:$0xff] %v662_v6  ;;  %679 = vst.msk [vmem:[#allocation2 + $0x28] sm:$0xff] %vm401_vm0, %v663_v46  ;;  %v648_v9 = vadd.f32 %v620_v47, %v592_v7  ;;  %v649_v10 = vadd.f32 %v620_v47, %v593_v8 }
 0x2c8   :  { %v569_v51 = vpop.permute.xlu1 %568 }
 0x2c9   :  { %v664_v4 = vmax.f32 %v648_v9, 0.0  ;;  %v665_v45 = vmax.f32 %v649_v10, 0.0  ;;  %v594_v14 = vmul.f32 %v569_v51, %v1362_v3  ;;  %v595_v15 = vmul.f32 %v569_v51, %v1365_v61 }
 0x2cb   :  { %680 = vst [vmem:[#allocation2 + $0x30] sm:$0xff] %v664_v4  ;;  %681 = vst.msk [vmem:[#allocation2 + $0x38] sm:$0xff] %vm401_vm0, %v665_v45  ;;  %v650_v16 = vadd.f32 %v625_v48, %v594_v14  ;;  %v651_v17 = vadd.f32 %v625_v48, %v595_v15 }
 0x2cc   :  { %v574_v59 = vpop.permute.xlu1 %573 }
 0x2cd   :  { %v666_v18 = vmax.f32 %v650_v16, 0.0  ;;  %v667_v53 = vmax.f32 %v651_v17, 0.0  ;;  %v596_v12 = vmul.f32 %v574_v59, %v1373_v11  ;;  %v597_v22 = vmul.f32 %v574_v59, %v1376_v5 }
 0x2cf   :  { %682 = vst [vmem:[#allocation2 + $0x40] sm:$0xff] %v666_v18  ;;  %683 = vst.msk [vmem:[#allocation2 + $0x48] sm:$0xff] %vm401_vm0, %v667_v53  ;;  %v652_v23 = vadd.f32 %v630_v37, %v596_v12  ;;  %v653_v24 = vadd.f32 %v630_v37, %v597_v22 }
 0x2d0   :  { %v579_v3 = vpop.permute.xlu1 %578 }
 0x2d1   :  { %v668_v61 = vmax.f32 %v652_v23, 0.0  ;;  %v669_v26 = vmax.f32 %v653_v24, 0.0  ;;  %v598_v20 = vmul.f32 %v579_v3, %v1384_v19  ;;  %v599_v30 = vmul.f32 %v579_v3, %v1387_v13 }
 0x2d3   :  { %684 = vst [vmem:[#allocation2 + $0x50] sm:$0xff] %v668_v61  ;;  %685 = vst.msk [vmem:[#allocation2 + $0x58] sm:$0xff] %vm401_vm0, %v669_v26  ;;  %v654_v31 = vadd.f32 %v635_v25, %v598_v20  ;;  %v655_v11 = vadd.f32 %v635_v25, %v599_v30 }
 0x2d4   :  { %v584_v33 = vpop.permute.xlu1 %583 }
 0x2d5   :  { %v670_v5 = vmax.f32 %v654_v31, 0.0  ;;  %v671_v34 = vmax.f32 %v655_v11, 0.0  ;;  %v600_v39 = vmul.f32 %v584_v33, %v1395_v27  ;;  %v601_v29 = vmul.f32 %v584_v33, %v1398_v21 }
 0x2d7   :  { %686 = vst [vmem:[#allocation2 + $0x60] sm:$0xff] %v670_v5  ;;  %687 = vst.msk [vmem:[#allocation2 + $0x68] sm:$0xff] %vm401_vm0, %v671_v34 }
 0x2d9   :  { %v640_v19 = vpop.permute.xlu1 %639 }
 0x2da   :  { %v656_v28 = vadd.f32 %v640_v19, %v600_v39  ;;  %v657_v13 = vadd.f32 %v640_v19, %v601_v29 }
 0x2dc   :  { %v672_v40 = vmax.f32 %v656_v28, 0.0  ;;  %v673_v42 = vmax.f32 %v657_v13, 0.0 }
 0x2de   :  { %688 = vst [vmem:[#allocation2 + $0x70] sm:$0xff] %v672_v40  ;;  %689 = vst.msk [vmem:[#allocation2 + $0x78] sm:$0xff] %vm401_vm0, %v673_v42 }
 0x2df   :  { %744 = shalt.err (!%p741_p4)
}
 0x2e0   :  { %s758_s22 = smov 256   ;;  %s759_s23 = smov 16  }
 0x2e1   :  { %701 = dma.vmem_to_hbm [thread:$0]  %s696_s20, 2048, %s1462_s3, [#allocation3], %s758_s22, %s758_s22, %s759_s23  }
 0x2e2   :  { %753 = dma.done.wait [#allocation3], 2048  }
 0x2e3   :  { %754 = vsyncadd [#allocation3], 4294965248 }
 0x2e4   :  { %705 = vsyncpa [#allocation3], 1 }

</bundles_post_ra>
